<compile_context>
chip_gen: v7x
topology: tpu7x:2x2x1
jax: 0.10.0
libtpu: 0.0.40
codegen_flags: <defaults>
</compile_context>

<pallas_src>
import functools

import jax
import jax.numpy as jnp
import numpy as np
from jax.experimental import pallas as pl
from jax.experimental.pallas import tpu as pltpu

_LANE = 128


# --------------------------------------------------------------------------
# Shared tile math
# --------------------------------------------------------------------------
def _pairwise_tile(fi, fj, f2r, lc, lr, vc, vr, *, sigma, w_leak,
                   mxu_dtype, ew_dtype, masked):
    """Per-(bm, bn) tile math shared by both passes. Returns (w, w_diff)."""
    # Row-tile squared norms computed in-kernel (drops the f2_col DMA stream;
    # O(bm*d) extra work vs O(bm*bn*d) tile compute).
    f2c = jnp.sum(fi * fi, axis=-1, keepdims=True)                 # [bm, 1] f32

    # Gram tile on the MXU.  In fast mode the operands are bf16 (native MXU
    # rate on all generations); accumulation stays f32.
    gram = jax.lax.dot_general(
        fi.astype(mxu_dtype), fj.astype(mxu_dtype),
        (((1,), (1,)), ((), ())), preferred_element_type=jnp.float32)

    # Squared-norm trick is cancellation-sensitive near the diagonal: keep the
    # subtraction + clamp in f32, then drop to the elementwise dtype.
    sq = jnp.maximum(f2c + f2r - 2.0 * gram, 0.0)
    f_dist = jnp.sqrt(sq).astype(ew_dtype)

    # 1-D labels: euclidean_dist(label, label) == max(|li - lj|, 1e-6).
    # Difference taken in f32, remaining elementwise math in ew_dtype
    # (bf16 on v6e/v7x halves pressure on the binding VALU slot).
    d = (lc - lr).astype(ew_dtype)
    l_dist = jnp.maximum(jnp.abs(d), 1e-6)
    w = jnp.exp(d * d * (-0.5 / (sigma * sigma))) + w_leak
    w_diff = w * jnp.abs(f_dist - l_dist)

    if masked:
        # Pad-and-mask: padded rows/columns contribute exactly 0 to all sums.
        w_diff = w_diff * (vc * vr).astype(ew_dtype)
    return w, w_diff


def _fold_lanes(x32, lane_groups):
    """VPU-add the bn/128 lane groups -> (bm, 128) f32 partial.

    Avoids a per-step cross-lane (XLU) reduce and a per-step 1-lane-wide
    masked store of the (bm, 1) accumulator.
    """
    part = x32[:, :_LANE]
    for g in range(1, lane_groups):
        part = part + x32[:, g * _LANE:(g + 1) * _LANE]
    return part


# --------------------------------------------------------------------------
# Kernels
# --------------------------------------------------------------------------
def _rml_sum_kernel(fi_ref, fj_ref, f2r_ref, lc_ref, lr_ref, vc_ref, vr_ref,
                    psum_ref, acc_ref, *, sigma, w_leak, mxu_dtype, ew_dtype,
                    masked, lane_groups):
    """Pass 1: per-row partial sums of w_diff across j tiles."""
    _, w_diff = _pairwise_tile(
        fi_ref[...], fj_ref[...], f2r_ref[...], lc_ref[...], lr_ref[...],
        vc_ref[...], vr_ref[...], sigma=sigma, w_leak=w_leak,
        mxu_dtype=mxu_dtype, ew_dtype=ew_dtype, masked=masked)

    @pl.when(pl.program_id(1) == 0)
    def _():
        acc_ref[...] = jnp.zeros_like(acc_ref)

    # Row-sum accumulation kept in f32 regardless of the elementwise dtype.
    acc_ref[...] += _fold_lanes(w_diff.astype(jnp.float32), lane_groups)

    # Single XLU cross-lane collapse + narrow (bm, 1) store per row stripe.
    @pl.when(pl.program_id(1) == pl.num_programs(1) - 1)
    def _():
        psum_ref[...] = jnp.sum(acc_ref[...], axis=-1, keepdims=True)


def _rml_masked_kernel(alpha_ref, fi_ref, fj_ref, f2r_ref, lc_ref, lr_ref,
                       vc_ref, vr_ref, num_ref, den_ref, nacc_ref, dacc_ref,
                       *, sigma, w_leak, mxu_dtype, ew_dtype, masked,
                       lane_groups):
    """Pass 2: recompute tiles, threshold against alpha, masked row sums."""
    w, w_diff = _pairwise_tile(
        fi_ref[...], fj_ref[...], f2r_ref[...], lc_ref[...], lr_ref[...],
        vc_ref[...], vr_ref[...], sigma=sigma, w_leak=w_leak,
        mxu_dtype=mxu_dtype, ew_dtype=ew_dtype, masked=masked)

    wd32 = w_diff.astype(jnp.float32)
    w32 = w.astype(jnp.float32)
    # Threshold compare in f32.  Padded pairs have w_diff == 0 and alpha >= 0,
    # so they are never selected into num or den.
    mask = wd32 > alpha_ref[0]

    @pl.when(pl.program_id(1) == 0)
    def _():
        nacc_ref[...] = jnp.zeros_like(nacc_ref)
        dacc_ref[...] = jnp.zeros_like(dacc_ref)

    nacc_ref[...] += _fold_lanes(jnp.where(mask, wd32, 0.0), lane_groups)
    dacc_ref[...] += _fold_lanes(jnp.where(mask, w32, 0.0), lane_groups)

    @pl.when(pl.program_id(1) == pl.num_programs(1) - 1)
    def _():
        num_ref[...] = jnp.sum(nacc_ref[...], axis=-1, keepdims=True)
        den_ref[...] = jnp.sum(dacc_ref[...], axis=-1, keepdims=True)


# --------------------------------------------------------------------------
# Wrapper
# --------------------------------------------------------------------------
def _supports_fast_math():
    """bf16 VPU/EUP exist on v6e/v7x; keep f32 elementwise on v5e and older."""
    try:
        kind = jax.devices()[0].device_kind.lower()
    except Exception:
        return False
    return any(tag in kind for tag in ("v6", "v7", "tpu7"))


def _pick_tiles(n_pad):
    """(bm, bn): multiples of 128 dividing n_pad.

    bn grows toward 1024 (fewer grid steps, lane-dense reduction); bm is
    capped at 512 and chosen so grid[0] >= 2 when possible (megacore split).
    """
    def largest(cap, need_two_blocks):
        k = min(cap // _LANE, n_pad // _LANE)
        while k >= 1:
            b = k * _LANE
            if n_pad % b == 0 and (not need_two_blocks
                                   or n_pad // b >= 2 or n_pad == _LANE):
                return b
            k -= 1
        return _LANE

    bn = largest(1024, need_two_blocks=False)
    bm = largest(512, need_two_blocks=True)
    return bm, bn


def reg_metric_loss(feature, label, alpha_prev=None, *,
                    sigma=1.0, w_leak=0.2, p=0.9, fast_math=None):
    """Pallas implementation of RegMetricLoss.forward.

    Returns (loss, new_alpha).  Pass alpha_prev=None for the first call, or
    the previously returned alpha for the EMA update.  fast_math=None
    auto-enables bf16 MXU operands + bf16 elementwise on v6e/v7x only.
    """
    if fast_math is None:
        fast_math = _supports_fast_math()
    mxu_dtype = jnp.bfloat16 if fast_math else jnp.float32
    ew_dtype = jnp.bfloat16 if fast_math else jnp.float32

    feature = jnp.asarray(feature, jnp.float32)
    n, d = feature.shape
    label = jnp.asarray(label, jnp.float32).reshape(n, 1)

    # Pad N up to a multiple of 128 (pad-and-mask; no huge single-tile
    # fallback for non-divisible N).
    n_pad = ((n + _LANE - 1) // _LANE) * _LANE
    masked = n_pad != n
    if masked:
        feature = jnp.pad(feature, ((0, n_pad - n), (0, 0)))
        label = jnp.pad(label, ((0, n_pad - n), (0, 0)))

    # O(N*D) precompute outside the kernel.  Only the row-oriented squared
    # norms are passed (the column version is recomputed in-kernel from fi).
    f2_row = jnp.sum(feature * feature, axis=1).reshape(1, n_pad)
    lab_col = label                                              # [N, 1]
    lab_row = label.reshape(1, n_pad)                            # [1, N]
    valid = (jnp.arange(n_pad) < n).astype(jnp.float32)
    valid_col = valid.reshape(n_pad, 1)
    valid_row = valid.reshape(1, n_pad)

    bm, bn = _pick_tiles(n_pad)
    grid = (n_pad // bm, n_pad // bn)
    lane_groups = bn // _LANE

    common_in_specs = [
        pl.BlockSpec((bm, d), lambda i, j: (i, 0)),   # feature rows (i tile)
        pl.BlockSpec((bn, d), lambda i, j: (j, 0)),   # feature rows (j tile)
        pl.BlockSpec((1, bn), lambda i, j: (0, j)),   # ||f||^2 row
        pl.BlockSpec((bm, 1), lambda i, j: (i, 0)),   # label column
        pl.BlockSpec((1, bn), lambda i, j: (0, j)),   # label row
        pl.BlockSpec((bm, 1), lambda i, j: (i, 0)),   # validity column
        pl.BlockSpec((1, bn), lambda i, j: (0, j)),   # validity row
    ]
    row_out_spec = pl.BlockSpec((bm, 1), lambda i, j: (i, 0))
    compiler_params = pltpu.CompilerParams(
        dimension_semantics=("parallel", "arbitrary"),   # i sharded across TCs
        vmem_limit_bytes=48 * 1024 * 1024)               # safe on v7x (64 MiB)
    cost = pl.CostEstimate(
        flops=2 * n_pad * n_pad * d + 16 * n_pad * n_pad,
        transcendentals=2 * n_pad * n_pad,
        bytes_accessed=4 * n_pad * d * (grid[0] + grid[1]) + 4 * 8 * n_pad)

    common_args = (feature, feature, f2_row, lab_col, lab_row,
                   valid_col, valid_row)
    kern_kwargs = dict(sigma=float(sigma), w_leak=float(w_leak),
                       mxu_dtype=mxu_dtype, ew_dtype=ew_dtype,
                       masked=masked, lane_groups=lane_groups)

    # ---- Pass 1: sum of w_diff -> mean -> EMA alpha --------------------
    psum = pl.pallas_call(
        functools.partial(_rml_sum_kernel, **kern_kwargs),
        out_shape=jax.ShapeDtypeStruct((n_pad, 1), jnp.float32),
        grid=grid,
        in_specs=common_in_specs,
        out_specs=row_out_spec,
        scratch_shapes=[pltpu.VMEM((bm, _LANE), jnp.float32)],
        compiler_params=compiler_params,
        cost_estimate=cost,
    )(*common_args)

    mean_diff = jnp.sum(psum) / jnp.float32(n * n)
    if alpha_prev is None:
        alpha = mean_diff
    else:
        alpha = p * jnp.asarray(alpha_prev, jnp.float32) + (1.0 - p) * mean_diff

    # ---- Pass 2: masked sums with alpha threshold (recompute tiles) ----
    alpha_arr = jnp.reshape(alpha, (1,)).astype(jnp.float32)
    num, den = pl.pallas_call(
        functools.partial(_rml_masked_kernel, **kern_kwargs),
        out_shape=(jax.ShapeDtypeStruct((n_pad, 1), jnp.float32),
                   jax.ShapeDtypeStruct((n_pad, 1), jnp.float32)),
        grid=grid,
        in_specs=[pl.BlockSpec(memory_space=pltpu.MemorySpace.SMEM)]
                 + common_in_specs,
        out_specs=(row_out_spec, row_out_spec),
        scratch_shapes=[pltpu.VMEM((bm, _LANE), jnp.float32),
                        pltpu.VMEM((bm, _LANE), jnp.float32)],
        compiler_params=compiler_params,
        cost_estimate=cost,
    )(alpha_arr, *common_args)

    loss = jnp.sum(num) / (jnp.sum(den) + 1e-9)
    return loss, alpha


# --------------------------------------------------------------------------
# Pure-JAX reference (matches the PyTorch forward)
# --------------------------------------------------------------------------
def _reference(feature, label, alpha_prev=None,
               *, sigma=1.0, w_leak=0.2, p=0.9):
    feature = jnp.asarray(feature, jnp.float32)
    label = jnp.asarray(label, jnp.float32).reshape(-1, 1)
    f2 = jnp.sum(feature ** 2, axis=1)
    f_dist = f2[None, :] + f2[:, None] - 2.0 * feature @ feature.T
    f_dist = jnp.sqrt(jax.nn.relu(f_dist))
    l2 = jnp.sum(label ** 2, axis=1, keepdims=True)
    l_dist = l2 + l2.T - 2.0 * label @ label.T
    l_dist = jnp.sqrt(jnp.maximum(l_dist, 1e-12))
    w = jnp.exp(-jnp.square(l_dist / sigma) / 2.0) + w_leak
    diff = jnp.abs(f_dist - l_dist)
    w_diff = w * diff
    mean_diff = jnp.mean(w_diff)
    alpha = mean_diff if alpha_prev is None else p * alpha_prev + (1 - p) * mean_diff
    mask = w_diff > alpha
    loss = jnp.sum(jnp.where(mask, w_diff, 0.0)) / (
        jnp.sum(jnp.where(mask, w, 0.0)) + 1e-9)
    return loss, alpha


if __name__ == "__main__":
    key = jax.random.PRNGKey(0)
    kf, kl, kf2, kl2, kf3, kl3 = jax.random.split(key, 6)

    # Small case (single 128x128 padded tile), f32 path, with EMA second call.
    N, D = 16, 32
    feature = jax.random.normal(kf, (N, D), dtype=jnp.float32)
    label = jax.random.uniform(kl, (N,), dtype=jnp.float32) * 10.0

    loss, alpha = reg_metric_loss(feature, label, alpha_prev=None,
                                  fast_math=False)
    loss, alpha = jax.block_until_ready((loss, alpha))
    loss2, alpha2 = reg_metric_loss(feature, label, alpha_prev=alpha,
                                    fast_math=False)
    loss2 = jax.block_until_ready(loss2)

    ref_loss, ref_alpha = _reference(feature, label, alpha_prev=None)
    ref_loss2, _ = _reference(feature, label, alpha_prev=ref_alpha)
    np.testing.assert_allclose(np.asarray(loss), np.asarray(ref_loss),
                               rtol=2e-3, atol=1e-5)
    np.testing.assert_allclose(np.asarray(alpha), np.asarray(ref_alpha),
                               rtol=2e-3, atol=1e-5)
    np.testing.assert_allclose(np.asarray(loss2), np.asarray(ref_loss2),
                               rtol=2e-3, atol=1e-5)

    # Larger case exercising a multi-tile grid (N=384 -> bm=128, bn=384).
    N2, D2 = 384, 64
    feature2 = jax.random.normal(kf2, (N2, D2), dtype=jnp.float32)
    label2 = jax.random.uniform(kl2, (N2,), dtype=jnp.float32) * 5.0
    loss3, alpha3 = reg_metric_loss(feature2, label2, alpha_prev=None,
                                    fast_math=False)
    loss3, alpha3 = jax.block_until_ready((loss3, alpha3))
    ref_loss3, ref_alpha3 = _reference(feature2, label2, alpha_prev=None)
    np.testing.assert_allclose(np.asarray(loss3), np.asarray(ref_loss3),
                               rtol=2e-3, atol=1e-5)
    np.testing.assert_allclose(np.asarray(alpha3), np.asarray(ref_alpha3),
                               rtol=2e-3, atol=1e-5)

    # Same case through the auto fast-math path (bf16 on v6e/v7x, f32 on v5e);
    # looser tolerance covers the bf16 elementwise / Gram rounding.
    loss3f, alpha3f = reg_metric_loss(feature2, label2, alpha_prev=None,
                                      fast_math=None)
    loss3f, alpha3f = jax.block_until_ready((loss3f, alpha3f))
    np.testing.assert_allclose(np.asarray(loss3f), np.asarray(ref_loss3),
                               rtol=5e-2, atol=1e-2)
    np.testing.assert_allclose(np.asarray(alpha3f), np.asarray(ref_alpha3),
                               rtol=5e-2, atol=1e-2)

    # Non-multiple-of-128 N exercising the pad-and-mask path (N=200 -> 256).
    N3, D3 = 200, 48
    feature3 = jax.random.normal(kf3, (N3, D3), dtype=jnp.float32)
    label3 = jax.random.uniform(kl3, (N3,), dtype=jnp.float32) * 8.0
    loss4, alpha4 = reg_metric_loss(feature3, label3, alpha_prev=None,
                                    fast_math=False)
    loss4, alpha4 = jax.block_until_ready((loss4, alpha4))
    ref_loss4, ref_alpha4 = _reference(feature3, label3, alpha_prev=None)
    np.testing.assert_allclose(np.asarray(loss4), np.asarray(ref_loss4),
                               rtol=2e-3, atol=1e-5)
    np.testing.assert_allclose(np.asarray(alpha4), np.asarray(ref_alpha4),
                               rtol=2e-3, atol=1e-5)

    print("KERNEL_OK")
</pallas_src>

<mosaic_0001>
module attributes {stable_mosaic.version = 11 : i64} {
  func.func @_rml_sum_kernel(%arg0: i32, %arg1: i32, %arg2: memref<128x32xf32, #tpu.memory_space<vmem>>, %arg3: memref<128x32xf32, #tpu.memory_space<vmem>>, %arg4: memref<1x128xf32, #tpu.memory_space<vmem>>, %arg5: memref<128x1xf32, #tpu.memory_space<vmem>>, %arg6: memref<1x128xf32, #tpu.memory_space<vmem>>, %arg7: memref<128x1xf32, #tpu.memory_space<vmem>>, %arg8: memref<1x128xf32, #tpu.memory_space<vmem>>, %arg9: memref<128x1xf32, #tpu.memory_space<vmem>>, %arg10: memref<128x128xf32, #tpu.memory_space<vmem>>) attributes {dimension_semantics = [#tpu.dimension_semantics<parallel>, #tpu.dimension_semantics<arbitrary>], iteration_bounds = array<i64: 1, 1>, scalar_prefetch = 0 : i64, scratch_operands = 1 : i64, tpu.core_type = #tpu.core_type<tc>, window_params = [{transform_indices = @transform_0, window_bounds = array<i64: 128, 32>}, {transform_indices = @transform_1, window_bounds = array<i64: 128, 32>}, {transform_indices = @transform_2, window_bounds = array<i64: 1, 128>}, {transform_indices = @transform_3, window_bounds = array<i64: 128, 1>}, {transform_indices = @transform_4, window_bounds = array<i64: 1, 128>}, {transform_indices = @transform_5, window_bounds = array<i64: 128, 1>}, {transform_indices = @transform_6, window_bounds = array<i64: 1, 128>}, {transform_indices = @transform_7, window_bounds = array<i64: 128, 1>}]} {
    %c0 = arith.constant 0 : index
    %c0_0 = arith.constant 0 : index
    %0 = vector.load %arg2[%c0, %c0_0] : memref<128x32xf32, #tpu.memory_space<vmem>>, vector<128x32xf32>
    %c0_1 = arith.constant 0 : index
    %c0_2 = arith.constant 0 : index
    %1 = vector.load %arg3[%c0_1, %c0_2] : memref<128x32xf32, #tpu.memory_space<vmem>>, vector<128x32xf32>
    %c0_3 = arith.constant 0 : index
    %c0_4 = arith.constant 0 : index
    %2 = vector.load %arg4[%c0_3, %c0_4] : memref<1x128xf32, #tpu.memory_space<vmem>>, vector<1x128xf32>
    %c0_5 = arith.constant 0 : index
    %c0_6 = arith.constant 0 : index
    %3 = vector.load %arg5[%c0_5, %c0_6] : memref<128x1xf32, #tpu.memory_space<vmem>>, vector<128x1xf32>
    %c0_7 = arith.constant 0 : index
    %c0_8 = arith.constant 0 : index
    %4 = vector.load %arg6[%c0_7, %c0_8] : memref<1x128xf32, #tpu.memory_space<vmem>>, vector<1x128xf32>
    %c0_9 = arith.constant 0 : index
    %c0_10 = arith.constant 0 : index
    %5 = vector.load %arg7[%c0_9, %c0_10] : memref<128x1xf32, #tpu.memory_space<vmem>>, vector<128x1xf32>
    %c0_11 = arith.constant 0 : index
    %c0_12 = arith.constant 0 : index
    %6 = vector.load %arg8[%c0_11, %c0_12] : memref<1x128xf32, #tpu.memory_space<vmem>>, vector<1x128xf32>
    %7 = arith.mulf %0, %0 : vector<128x32xf32>
    %cst = arith.constant dense<0.000000e+00> : vector<128xf32>
    %8 = vector.multi_reduction <add>, %7, %cst [1] : vector<128x32xf32> to vector<128xf32>
    %9 = vector.shape_cast %8 : vector<128xf32> to vector<128x1xf32>
    %cst_13 = arith.constant dense<0.000000e+00> : vector<128x128xf32>
    %10 = tpu.matmul %0, %1, %cst_13 {dimension_numbers = #tpu.dot_dimension_numbers<[1], [1], [0], [0], [0, 0, 1, 0], [], []>} : vector<128x32xf32>, vector<128x32xf32>, vector<128x128xf32> -> vector<128x128xf32>
    %11 = vector.broadcast %9 : vector<128x1xf32> to vector<128x128xf32>
    %12 = vector.broadcast %2 : vector<1x128xf32> to vector<128x128xf32>
    %13 = arith.addf %11, %12 : vector<128x128xf32>
    %cst_14 = arith.constant 2.000000e+00 : f32
    %14 = vector.broadcast %cst_14 : f32 to vector<128x128xf32>
    %15 = arith.mulf %14, %10 : vector<128x128xf32>
    %16 = arith.subf %13, %15 : vector<128x128xf32>
    %cst_15 = arith.constant 0.000000e+00 : f32
    %17 = vector.broadcast %cst_15 : f32 to vector<128x128xf32>
    %18 = arith.maximumf %16, %17 : vector<128x128xf32>
    %19 = math.sqrt %18 : vector<128x128xf32>
    %20 = vector.broadcast %3 : vector<128x1xf32> to vector<128x128xf32>
    %21 = vector.broadcast %4 : vector<1x128xf32> to vector<128x128xf32>
    %22 = arith.subf %20, %21 : vector<128x128xf32>
    %23 = math.absf %22 : vector<128x128xf32>
    %cst_16 = arith.constant 9.99999997E-7 : f32
    %24 = vector.broadcast %cst_16 : f32 to vector<128x128xf32>
    %25 = arith.maximumf %23, %24 : vector<128x128xf32>
    %26 = arith.mulf %22, %22 : vector<128x128xf32>
    %cst_17 = arith.constant -5.000000e-01 : f32
    %27 = vector.broadcast %cst_17 : f32 to vector<128x128xf32>
    %28 = arith.mulf %26, %27 : vector<128x128xf32>
    %29 = math.exp %28 : vector<128x128xf32>
    %cst_18 = arith.constant 2.000000e-01 : f32
    %30 = vector.broadcast %cst_18 : f32 to vector<128x128xf32>
    %31 = arith.addf %29, %30 : vector<128x128xf32>
    %32 = arith.subf %19, %25 : vector<128x128xf32>
    %33 = math.absf %32 : vector<128x128xf32>
    %34 = arith.mulf %31, %33 : vector<128x128xf32>
    %35 = vector.broadcast %5 : vector<128x1xf32> to vector<128x128xf32>
    %36 = vector.broadcast %6 : vector<1x128xf32> to vector<128x128xf32>
    %37 = arith.mulf %35, %36 : vector<128x128xf32>
    %38 = arith.mulf %34, %37 : vector<128x128xf32>
    %c0_i32 = arith.constant 0 : i32
    %39 = arith.cmpi eq, %arg1, %c0_i32 : i32
    %40 = arith.extui %39 : i1 to i32
    %c0_i32_19 = arith.constant 0 : i32
    %41 = arith.cmpi ne, %40, %c0_i32_19 : i32
    scf.if %41 {
      %cst_26 = arith.constant 0.000000e+00 : f32
      %48 = vector.broadcast %cst_26 : f32 to vector<128x128xf32>
      %c0_27 = arith.constant 0 : index
      %c0_28 = arith.constant 0 : index
      %49 = vector.load %arg10[%c0_27, %c0_28] : memref<128x128xf32, #tpu.memory_space<vmem>>, vector<128x128xf32>
      tpu.vector_store %arg10[%c0_27, %c0_28], %48 {strides = array<i32>} : memref<128x128xf32, #tpu.memory_space<vmem>>, vector<128x128xf32>,
    } else {
    }
    %c0_20 = arith.constant 0 : index
    %c0_21 = arith.constant 0 : index
    %42 = vector.load %arg10[%c0_20, %c0_21] : memref<128x128xf32, #tpu.memory_space<vmem>>, vector<128x128xf32>
    %43 = arith.addf %42, %38 : vector<128x128xf32>
    %c0_22 = arith.constant 0 : index
    %c0_23 = arith.constant 0 : index
    %44 = vector.load %arg10[%c0_22, %c0_23] : memref<128x128xf32, #tpu.memory_space<vmem>>, vector<128x128xf32>
    tpu.vector_store %arg10[%c0_22, %c0_23], %43 {strides = array<i32>} : memref<128x128xf32, #tpu.memory_space<vmem>>, vector<128x128xf32>,
    %c0_i32_24 = arith.constant 0 : i32
    %45 = arith.cmpi eq, %arg1, %c0_i32_24 : i32
    %46 = arith.extui %45 : i1 to i32
    %c0_i32_25 = arith.constant 0 : i32
    %47 = arith.cmpi ne, %46, %c0_i32_25 : i32
    scf.if %47 {
      %c0_26 = arith.constant 0 : index
      %c0_27 = arith.constant 0 : index
      %48 = vector.load %arg10[%c0_26, %c0_27] : memref<128x128xf32, #tpu.memory_space<vmem>>, vector<128x128xf32>
      %cst_28 = arith.constant dense<0.000000e+00> : vector<128xf32>
      %49 = vector.multi_reduction <add>, %48, %cst_28 [1] : vector<128x128xf32> to vector<128xf32>
      %50 = vector.shape_cast %49 : vector<128xf32> to vector<128x1xf32>
      %c0_29 = arith.constant 0 : index
      %c0_30 = arith.constant 0 : index
      %51 = vector.load %arg9[%c0_29, %c0_30] : memref<128x1xf32, #tpu.memory_space<vmem>>, vector<128x1xf32>
      tpu.vector_store %arg9[%c0_29, %c0_30], %50 {strides = array<i32>} : memref<128x1xf32, #tpu.memory_space<vmem>>, vector<128x1xf32>,
    } else {
    }
    return
  }
  func.func @transform_0(%arg0: i32, %arg1: i32) -> (i32, i32) {
    %c0_i32 = arith.constant 0 : i32
    %c0_i32_0 = arith.constant 0 : i32
    return %arg0, %c0_i32 : i32, i32
  }
  func.func @transform_1(%arg0: i32, %arg1: i32) -> (i32, i32) {
    %c0_i32 = arith.constant 0 : i32
    %c0_i32_0 = arith.constant 0 : i32
    return %arg1, %c0_i32 : i32, i32
  }
  func.func @transform_2(%arg0: i32, %arg1: i32) -> (i32, i32) {
    %c0_i32 = arith.constant 0 : i32
    %c0_i32_0 = arith.constant 0 : i32
    return %c0_i32, %arg1 : i32, i32
  }
  func.func @transform_3(%arg0: i32, %arg1: i32) -> (i32, i32) {
    %c0_i32 = arith.constant 0 : i32
    %c0_i32_0 = arith.constant 0 : i32
    return %arg0, %c0_i32 : i32, i32
  }
  func.func @transform_4(%arg0: i32, %arg1: i32) -> (i32, i32) {
    %c0_i32 = arith.constant 0 : i32
    %c0_i32_0 = arith.constant 0 : i32
    return %c0_i32, %arg1 : i32, i32
  }
  func.func @transform_5(%arg0: i32, %arg1: i32) -> (i32, i32) {
    %c0_i32 = arith.constant 0 : i32
    %c0_i32_0 = arith.constant 0 : i32
    return %arg0, %c0_i32 : i32, i32
  }
  func.func @transform_6(%arg0: i32, %arg1: i32) -> (i32, i32) {
    %c0_i32 = arith.constant 0 : i32
    %c0_i32_0 = arith.constant 0 : i32
    return %c0_i32, %arg1 : i32, i32
  }
  func.func @transform_7(%arg0: i32, %arg1: i32) -> (i32, i32) {
    %c0_i32 = arith.constant 0 : i32
    %c0_i32_0 = arith.constant 0 : i32
    return %arg0, %c0_i32 : i32, i32
  }
}

</mosaic_0001>

<bundles_post_ra>
// kernel: tpu_custom_call.1
= control target key start
LH: loop header
LB: loop body
LE: loop exit
PB: predicated region body
PF: predicated region fallthrough
CT: control target
= control target key end

     0   :  { %vm109_vm0 = vcmask 261120   ;;  %v1355_v3 = vmov 0   ;;  %s2378_s1 = inlined_call_operand.vmem [shape: f32[128,32], index: 1, kind: input, shape index: {}]   ;;  %s2379_s0 = inlined_call_operand.vmem [shape: f32[128,32], index: 0, kind: input, shape index: {}]   ;;  %s2380_s3 = inlined_call_operand.vmem [shape: f32[128,1], index: 3, kind: input, shape index: {}]   ;;  %s2381_s5 = inlined_call_operand.vmem [shape: f32[128,1], index: 5, kind: input, shape index: {}]   ;;  %s2382_s4 = inlined_call_operand.vmem [shape: f32[1,128], index: 4, kind: input, shape index: {}]   ;;  %s2383_s2 = inlined_call_operand.vmem [shape: f32[1,128], index: 2, kind: input, shape index: {}]   ;;  %s2384_s6 = inlined_call_operand.vmem [shape: f32[1,128], index: 6, kind: input, shape index: {}]   ;;  %s2385_s7 = inlined_call_operand.vmem [shape: f32[128,1], index: 7, kind: output, shape index: {}]  }
   0x1   :  { %v42_v0 = vld [vmem:[%s2378_s1] sm:$0xff]  ;;  %v43_v1 = vld [vmem:[%s2378_s1 + $0x8] sm:$0xff]  ;;  %vm1404_vm1 = vmpackc.low %vm109_vm0, %vm109_vm0  ;;  %1290 = vset.pattern.permute.xlu1 %v1355_v3  ;;  %1289 = vset.pattern.permute.xlu0 %v1355_v3 }
   0x2   :  { %v1224_v4 = vpack.c.bf16 %v43_v1, %v42_v0  ;;  %v1411_v5 = vld [vmem:[%s2379_s0 + $0x10] sm:$0xff]  ;;  %v1416_v6 = vld [vmem:[%s2379_s0 + $0x18] sm:$0xff]  ;;  %v1435_v12 = vld [vmem:[%s2379_s0 + $0x28] sm:$0xff] }
   0x3   :  { %v44_v7 = vld [vmem:[%s2378_s1 + $0x10] sm:$0xff]  ;;  %v95_v8 = vmul.f32 %v1411_v5, %v1411_v5  ;;  %v96_v9 = vmul.f32 %v1416_v6, %v1416_v6  ;;  %v45_v10 = vld [vmem:[%s2378_s1 + $0x18] sm:$0xff]  ;;  %v98_v15 = vmul.f32 %v1435_v12, %v1435_v12  ;;  %v46_v16 = vld [vmem:[%s2378_s1 + $0x20] sm:$0xff] }
   0x4   :  { %1226 = vmatprep.subr.msk.bf16.mxu0 %vm1404_vm1, %v1224_v4  ;;  %1272 = vmatprep.subr.msk.bf16.mxu1 %vm1404_vm1, %v1224_v4  ;;  %v1230_v11 = vpack.c.bf16 %v45_v10, %v44_v7  ;;  %v47_v17 = vld [vmem:[%s2378_s1 + $0x28] sm:$0xff]  ;;  %v26_v18 = vld [vmem:[%s2379_s0] sm:$0xff]  ;;  %v1461_v19 = vld [vmem:[%s2379_s0 + $0x38] sm:$0xff] }
   0x5   :  { %1229 = vmatpush3.bf16.xpose.msk.msra.mxu0 %vm1404_vm1, %v1224_v4  ;;  %1280 = vmatpush3.bf16.xpose.msk.msra.mxu1 %vm1404_vm1, %v1224_v4  ;;  %v116_v13 = vsel %vm109_vm0, %v95_v8, 0.0  ;;  %v119_v14 = vsel %vm109_vm0, %v96_v9, 0.0  ;;  %v93_v20 = vmul.f32 %v26_v18, %v26_v18  ;;  %v1466_v21 = vld [vmem:[%s2379_s0 + $0x8] sm:$0xff]  ;;  %v1474_v23 = vld [vmem:[%s2379_s0 + $0x20] sm:$0xff]  ;;  %v1236_v24 = vpack.c.bf16 %v47_v17, %v46_v16  ;;  %v1499_v32 = vld [vmem:[%s2379_s0 + $0x30] sm:$0xff] }
   0x6   :  { %117 = vadd.xlane.f32.xlu1 %v116_v13  ;;  %1232 = vmatprep.subr.msk.bf16.mxu0 %vm1404_vm1, %v1230_v11  ;;  %v94_v22 = vmul.f32 %v1466_v21, %v1466_v21  ;;  %v125_v26 = vsel %vm109_vm0, %v98_v15, 0.0  ;;  %v100_v27 = vmul.f32 %v1461_v19, %v1461_v19  ;;  %v34_v28 = vld [vmem:[%s2379_s0 + $0x40] sm:$0xff]  ;;  %v1486_v29 = vld [vmem:[%s2379_s0 + $0x48] sm:$0xff]  ;;  %v97_v31 = vmul.f32 %v1474_v23, %v1474_v23  ;;  %v48_v35 = vld [vmem:[%s2378_s1 + $0x30] sm:$0xff] }
   0x7   :  { %1273 = vmatprep.subr.msk.bf16.mxu1 %vm1404_vm1, %v1230_v11  ;;  %1200 = vmatprep.mubr.msk.f32.mxu0 %vm109_vm0, %v26_v18  ;;  %v110_v25 = vsel %vm109_vm0, %v93_v20, 0.0  ;;  %v102_v34 = vmul.f32 %v1486_v29, %v1486_v29  ;;  %v49_v36 = vld [vmem:[%s2378_s1 + $0x38] sm:$0xff]  ;;  %v99_v39 = vmul.f32 %v1499_v32, %v1499_v32  ;;  %v1528_v43 = vld [vmem:[%s2379_s0 + $0x68] sm:$0xff]  ;;  %v101_v45 = vmul.f32 %v34_v28, %v34_v28  ;;  %v1538_v46 = vld [vmem:[%s2379_s0 + $0x50] sm:$0xff] }
   0x8   :  { %111 = vadd.xlane.f32.xlu0 %v110_v25  ;;  %v113_v30 = vsel %vm109_vm0, %v94_v22, 0.0  ;;  %1212 = vmatprep.mubr.msk.f32.mxu1 %vm109_vm0, %v34_v28  ;;  %v131_v33 = vsel %vm109_vm0, %v100_v27, 0.0  ;;  %v1517_v37 = vld [vmem:[%s2379_s0 + $0x58] sm:$0xff]  ;;  %v122_v38 = vsel %vm109_vm0, %v97_v31, 0.0  ;;  %v1242_v40 = vpack.c.bf16 %v49_v36, %v48_v35  ;;  %v50_v49 = vld [vmem:[%s2378_s1 + $0x40] sm:$0xff]  ;;  %v51_v50 = vld [vmem:[%s2378_s1 + $0x48] sm:$0xff] }
   0x9   :  { %v137_v41 = vsel %vm109_vm0, %v102_v34, 0.0  ;;  %v104_v42 = vmul.f32 %v1517_v37, %v1517_v37  ;;  %v128_v44 = vsel %vm109_vm0, %v99_v39, 0.0  ;;  %v106_v48 = vmul.f32 %v1528_v43, %v1528_v43  ;;  %v1556_v51 = vld [vmem:[%s2379_s0 + $0x78] sm:$0xff]  ;;  %v1564_v54 = vld [vmem:[%s2379_s0 + $0x60] sm:$0xff]  ;;  %v1579_v60 = vld [vmem:[%s2379_s0 + $0x70] sm:$0xff] }
   0xa   :  { %120 = vadd.xlane.f32.xlu1 %v119_v14  ;;  %v134_v52 = vsel %vm109_vm0, %v101_v45, 0.0  ;;  %v103_v53 = vmul.f32 %v1538_v46, %v1538_v46  ;;  %v1248_v55 = vpack.c.bf16 %v51_v50, %v50_v49  ;;  %v108_v57 = vmul.f32 %v1556_v51, %v1556_v51  ;;  %v52_v62 = vld [vmem:[%s2378_s1 + $0x50] sm:$0xff]  ;;  %v53_v63 = vld [vmem:[%s2378_s1 + $0x58] sm:$0xff]  ;;  %v54_v7 = vld [vmem:[%s2378_s1 + $0x60] sm:$0xff] }
   0xb   :  { %v143_v47 = vsel %vm109_vm0, %v104_v42, 0.0  ;;  %v149_v56 = vsel %vm109_vm0, %v106_v48, 0.0  ;;  %v105_v59 = vmul.f32 %v1564_v54, %v1564_v54  ;;  %v107_v1 = vmul.f32 %v1579_v60, %v1579_v60  ;;  %v55_v8 = vld [vmem:[%s2378_s1 + $0x68] sm:$0xff]  ;;  %v56_v10 = vld [vmem:[%s2378_s1 + $0x70] sm:$0xff]  ;;  %v62_v16 = vld [vmem:[%s2380_s3 + $0x18] sm:$0xff] }
   0xc   :  { %114 = vadd.xlane.f32.xlu0 %v113_v30  ;;  %v140_v58 = vsel %vm109_vm0, %v103_v53, 0.0  ;;  %v155_v61 = vsel %vm109_vm0, %v108_v57, 0.0  ;;  %v1254_v3 = vpack.c.bf16 %v53_v63, %v52_v62  ;;  %v1260_v9 = vpack.c.bf16 %v55_v8, %v54_v7  ;;  %v60_v13 = vld [vmem:[%s2380_s3 + $0x8] sm:$0xff]  ;;  %v61_v15 = vld [vmem:[%s2380_s3 + $0x10] sm:$0xff]  ;;  %v59_v17 = vld [vmem:[%s2380_s3] sm:$0xff] }
   0xd   :  { %1235 = vmatpush3.bf16.xpose.msk.msra.mxu0 %vm1404_vm1, %v1230_v11  ;;  %1281 = vmatpush3.bf16.xpose.msk.msra.mxu1 %vm1404_vm1, %v1230_v11  ;;  %v146_v0 = vsel %vm109_vm0, %v105_v59, 0.0  ;;  %v152_v4 = vsel %vm109_vm0, %v107_v1, 0.0  ;;  %v57_v11 = vld [vmem:[%s2378_s1 + $0x78] sm:$0xff]  ;;  %v63_v18 = vld [vmem:[%s2380_s3 + $0x20] sm:$0xff]  ;;  %v68_v20 = vld [vmem:[%s2380_s3 + $0x48] sm:$0xff] }
   0xe   :  { %126 = vadd.xlane.f32.xlu1 %v125_v26  ;;  %1238 = vmatprep.subr.msk.bf16.mxu0 %vm1404_vm1, %v1236_v24  ;;  %v1266_v14 = vpack.c.bf16 %v57_v11, %v56_v10  ;;  %v64_v22 = vld [vmem:[%s2380_s3 + $0x28] sm:$0xff]  ;;  %v65_v2 = vld [vmem:[%s2380_s3 + $0x30] sm:$0xff]  ;;  %v79_v26 = vld [vmem:[%s2381_s5 + $0x18] sm:$0xff] }
   0xf   :  { %1274 = vmatprep.subr.msk.bf16.mxu1 %vm1404_vm1, %v1236_v24  ;;  %v72_v25 = vld [vmem:[%s2380_s3 + $0x68] sm:$0xff]  ;;  %v71_v27 = vld [vmem:[%s2380_s3 + $0x60] sm:$0xff]  ;;  %v73_v28 = vld [vmem:[%s2380_s3 + $0x70] sm:$0xff] }
  0x10   :  { %123 = vadd.xlane.f32.xlu0 %v122_v38  ;;  %v76_v30 = vld [vmem:[%s2381_s5] sm:$0xff]  ;;  %v85_v31 = vld [vmem:[%s2381_s5 + $0x48] sm:$0xff]  ;;  %v82_v36 = vld [vmem:[%s2381_s5 + $0x30] sm:$0xff] }
  0x11   :  { %v80_v34 = vld [vmem:[%s2381_s5 + $0x20] sm:$0xff]  ;;  %v89_v35 = vld [vmem:[%s2381_s5 + $0x68] sm:$0xff]  ;;  %v86_v39 = vld [vmem:[%s2381_s5 + $0x50] sm:$0xff] }
  0x12   :  { %132 = vadd.xlane.f32.xlu1 %v131_v33  ;;  %v87_v33 = vld [vmem:[%s2381_s5 + $0x58] sm:$0xff]  ;;  %v84_v38 = vld [vmem:[%s2381_s5 + $0x40] sm:$0xff] }
  0x13   :  { %v1789_v10 = vld [vmem:[%s2382_s4] ss:$0 sm:$0xff] }
  0x14   :  { %129 = vadd.xlane.f32.xlu0 %v128_v44 }
  0x15   :  { %1241 = vmatpush3.bf16.xpose.msk.msra.mxu0 %vm1404_vm1, %v1236_v24  ;;  %1282 = vmatpush3.bf16.xpose.msk.msra.mxu1 %vm1404_vm1, %v1236_v24  ;;  %v70_v24 = vld [vmem:[%s2380_s3 + $0x58] sm:$0xff] }
  0x16   :  { %138 = vadd.xlane.f32.xlu1 %v137_v41  ;;  %1244 = vmatprep.subr.msk.bf16.mxu0 %vm1404_vm1, %v1242_v40  ;;  %v90_v41 = vld [vmem:[%s2381_s5 + $0x70] sm:$0xff] }
  0x17   :  { %1275 = vmatprep.subr.msk.bf16.mxu1 %vm1404_vm1, %v1242_v40 }
  0x18   :  { %135 = vadd.xlane.f32.xlu0 %v134_v52 }
  0x1a   :  { %144 = vadd.xlane.f32.xlu1 %v143_v47 }
  0x1c   :  { %141 = vadd.xlane.f32.xlu0 %v140_v58 }
  0x1d   :  { %1247 = vmatpush3.bf16.xpose.msk.msra.mxu0 %vm1404_vm1, %v1242_v40  ;;  %1283 = vmatpush3.bf16.xpose.msk.msra.mxu1 %vm1404_vm1, %v1242_v40  ;;  %v88_v40 = vld [vmem:[%s2381_s5 + $0x60] sm:$0xff] }
  0x1e   :  { %150 = vadd.xlane.f32.xlu1 %v149_v56  ;;  %1250 = vmatprep.subr.msk.bf16.mxu0 %vm1404_vm1, %v1248_v55 }
  0x1f   :  { %1276 = vmatprep.subr.msk.bf16.mxu1 %vm1404_vm1, %v1248_v55 }
  0x20   :  { %147 = vadd.xlane.f32.xlu0 %v146_v0 }
  0x22   :  { %156 = vadd.xlane.f32.xlu1 %v155_v61 }
  0x24   :  { %153 = vadd.xlane.f32.xlu0 %v152_v4 }
  0x25   :  { %1253 = vmatpush3.bf16.xpose.msk.msra.mxu0 %vm1404_vm1, %v1248_v55  ;;  %1284 = vmatpush3.bf16.xpose.msk.msra.mxu1 %vm1404_vm1, %v1248_v55 }
  0x26   :  { %1256 = vmatprep.subr.msk.bf16.mxu0 %vm1404_vm1, %v1254_v3  ;;  %1277 = vmatprep.subr.msk.bf16.mxu1 %vm1404_vm1, %v1254_v3 }
  0x2d   :  { %1259 = vmatpush3.bf16.xpose.msk.msra.mxu0 %vm1404_vm1, %v1254_v3  ;;  %1285 = vmatpush3.bf16.xpose.msk.msra.mxu1 %vm1404_vm1, %v1254_v3 }
  0x2e   :  { %1262 = vmatprep.subr.msk.bf16.mxu0 %vm1404_vm1, %v1260_v9  ;;  %1278 = vmatprep.subr.msk.bf16.mxu1 %vm1404_vm1, %v1260_v9 }
  0x33   :  { %588 = vperm.xlu1 %1290, %v60_v13  }
  0x35   :  { %1265 = vmatpush3.bf16.xpose.msk.msra.mxu0 %vm1404_vm1, %v1260_v9  ;;  %1286 = vmatpush3.bf16.xpose.msk.msra.mxu1 %vm1404_vm1, %v1260_v9 }
  0x36   :  { %1268 = vmatprep.subr.msk.bf16.mxu0 %vm1404_vm1, %v1266_v14  ;;  %1279 = vmatprep.subr.msk.bf16.mxu1 %vm1404_vm1, %v1266_v14 }
  0x37   :  { %593 = vperm.xlu1 %1290, %v61_v15  }
  0x3a   :  { %583 = vperm.xlu0 %1289, %v59_v17  }
  0x3b   :  { %598 = vperm.xlu1 %1290, %v62_v16  }
  0x3d   :  { %1271 = vmatpush3.bf16.xpose.msk.msra.mxu0 %vm1404_vm1, %v1266_v14  ;;  %1287 = vmatpush3.bf16.xpose.msk.msra.mxu1 %vm1404_vm1, %v1266_v14 }
  0x3e   :  { %628 = vperm.xlu0 %1289, %v68_v20  }
  0x3f   :  { %603 = vperm.xlu1 %1290, %v63_v18  }
  0x42   :  { %638 = vperm.xlu0 %1289, %v70_v24  }
  0x43   :  { %608 = vperm.xlu1 %1290, %v64_v22  }
  0x44   :  { %1201 = vmatmul.mubr.msk.f32.vlgmr.msra.gmra.mrb[0].mxu0 %vm109_vm0, %v1466_v21  ;;  %1213 = vmatmul.mubr.msk.f32.vlgmr.msra.gmra.mrb[0].mxu1 %vm109_vm0, %v1486_v29  ;;  %v66_v21 = vld [vmem:[%s2380_s3 + $0x38] sm:$0xff] }
  0x45   :  { %1203 = vmatprep.mubr.msk.f32.mxu0 %vm109_vm0, %v1411_v5  ;;  %1215 = vmatprep.mubr.msk.f32.mxu1 %vm109_vm0, %v1538_v46  ;;  %v74_v5 = vld [vmem:[%s2380_s3 + $0x78] sm:$0xff] }
  0x46   :  { %648 = vperm.xlu0 %1289, %v72_v25   ;;  %v83_v29 = vld [vmem:[%s2381_s5 + $0x38] sm:$0xff]  ;;  %v1820_v25 = vld [vmem:[%s2383_s2] ss:$0 sm:$0xff] }
  0x47   :  { %613 = vperm.xlu1 %1290, %v65_v2  }
  0x48   :  { %1204 = vmatmul.mubr.msk.f32.gmra.mrb[2].mxu0 %vm109_vm0, %v1416_v6  ;;  %1216 = vmatmul.mubr.msk.f32.gmra.mrb[2].mxu1 %vm109_vm0, %v1517_v37  ;;  %v67_v6 = vld [vmem:[%s2380_s3 + $0x40] sm:$0xff]  ;;  %v91_v37 = vld [vmem:[%s2381_s5 + $0x78] sm:$0xff] }
  0x49   :  { %1206 = vmatprep.mubr.msk.f32.mxu0 %vm109_vm0, %v1474_v23  ;;  %1218 = vmatprep.mubr.msk.f32.mxu1 %vm109_vm0, %v1564_v54  ;;  %v77_v23 = vld [vmem:[%s2381_s5 + $0x8] sm:$0xff] }
  0x4a   :  { %658 = vperm.xlu0 %1289, %v74_v5  }
  0x4b   :  { %618 = vperm.xlu1 %1290, %v66_v21  }
  0x4c   :  { %1207 = vmatmul.mubr.msk.f32.gmra.mrb[4].mxu0 %vm109_vm0, %v1435_v12  ;;  %1219 = vmatmul.mubr.msk.f32.gmra.mrb[4].mxu1 %vm109_vm0, %v1528_v43  ;;  %v69_v12 = vld [vmem:[%s2380_s3 + $0x50] sm:$0xff] }
  0x4d   :  { %1209 = vmatprep.mubr.msk.f32.mxu0 %vm109_vm0, %v1499_v32  ;;  %1221 = vmatprep.mubr.msk.f32.mxu1 %vm109_vm0, %v1579_v60  ;;  %v78_v32 = vld [vmem:[%s2381_s5 + $0x10] sm:$0xff] }
  0x4e   :  { %850 = vperm.xlu0 %1289, %v77_v23  }
  0x4f   :  { %623 = vperm.xlu1 %1290, %v67_v6  }
  0x50   :  { %1210 = vmatmul.mubr.msk.f32.gmra.mrb[6].mxu0 %vm109_vm0, %v1461_v19  ;;  %1222 = vmatmul.mubr.msk.f32.gmra.mrb[6].mxu1 %vm109_vm0, %v1556_v51  ;;  %v81_v19 = vld [vmem:[%s2381_s5 + $0x28] sm:$0xff] }
  0x52   :  { %860 = vperm.xlu0 %1289, %v79_v26  }
  0x53   :  { %633 = vperm.xlu1 %1290, %v69_v12  }
  0x56   :  { %870 = vperm.xlu0 %1289, %v81_v19  }
  0x57   :  { %643 = vperm.xlu1 %1290, %v71_v27  }
  0x5a   :  { %880 = vperm.xlu0 %1289, %v83_v29  }
  0x5b   :  { %653 = vperm.xlu1 %1290, %v73_v28  }
  0x5e   :  { %890 = vperm.xlu0 %1289, %v85_v31  }
  0x5f   :  { %845 = vperm.xlu1 %1290, %v76_v30  }
  0x62   :  { %900 = vperm.xlu0 %1289, %v87_v33  }
  0x63   :  { %855 = vperm.xlu1 %1290, %v78_v32  }
  0x66   :  { %910 = vperm.xlu0 %1289, %v89_v35  }
  0x67   :  { %865 = vperm.xlu1 %1290, %v80_v34  }
  0x6a   :  { %920 = vperm.xlu0 %1289, %v91_v37  }
  0x6b   :  { %875 = vperm.xlu1 %1290, %v82_v36  }
  0x6f   :  { %885 = vperm.xlu1 %1290, %v84_v38  }
  0x73   :  { %895 = vperm.xlu1 %1290, %v86_v39  }
  0x77   :  { %905 = vperm.xlu1 %1290, %v88_v40  }
  0x7b   :  { %915 = vperm.xlu1 %1290, %v90_v41  }
  0x93   :  { %v118_v42 = vpop.xlane.xlu1 %117 }
  0x94   :  { %v1840_v28 = vadd.f32 %v1820_v25, %v118_v42 }
  0x95   :  { %v112_v48 = vpop.xlane.xlu0 %111 }
  0x96   :  { %v1858_v37 = vadd.f32 %v1820_v25, %v112_v48 }
  0x97   :  { %v121_v43 = vpop.xlane.xlu1 %120 }
  0x98   :  { %v1850_v33 = vadd.f32 %v1820_v25, %v121_v43 }
  0x99   :  { %v1770_v50 = vpop.xlane.xlu0 %114 }
  0x9b   :  { %v1760_v44 = vpop.xlane.xlu1 %126 }
  0x9c   :  { %v1867_v41 = vadd.f32 %v1820_v25, %v1760_v44  ;;  %v1880_v44 = vadd.f32 %v1820_v25, %v1770_v50 }
  0x9d   :  { %v1774_v52 = vpop.xlane.xlu0 %123 }
  0x9f   :  { %v1762_v45 = vpop.xlane.xlu1 %132 }
  0xa1   :  { %v1776_v54 = vpop.xlane.xlu0 %129 }
  0xa3   :  { %v1764_v46 = vpop.xlane.xlu1 %138 }
  0xa5   :  { %v1778_v56 = vpop.xlane.xlu0 %135 }
  0xa7   :  { %v1766_v47 = vpop.xlane.xlu1 %144 }
  0xa9   :  { %v1780_v58 = vpop.xlane.xlu0 %141 }
  0xab   :  { %v1768_v49 = vpop.xlane.xlu1 %150 }
  0xad   :  { %v1782_v60 = vpop.xlane.xlu0 %147 }
  0xaf   :  { %v1772_v51 = vpop.xlane.xlu1 %156 }
  0xb1   :  { %v1784_v62 = vpop.xlane.xlu0 %153 }
  0xb3   :  { %v589_v53 = vpop.permute.xlu1 %588 }
  0xb4   :  { %v1792_v13 = vsub.f32 %v589_v53, %v1789_v10 }
  0xb6   :  { %v716_v20 = vmul.f32 %v1792_v13, %v1792_v13 }
  0xb7   :  { %v594_v55 = vpop.permute.xlu1 %593 }
  0xb8   :  { %v1797_v15 = vsub.f32 %v594_v55, %v1789_v10  ;;  %v732_v26 = vmul.f32 -0.5, %v716_v20  ;;  %v1893_v20 = vadd.f32 %v1820_v25, %v1762_v45 }
  0xb9   :  { %v584_v0 = vpop.permute.xlu0 %583 }
  0xba   :  { %v1805_v18 = vsub.f32 %v584_v0, %v1789_v10  ;;  %v717_v24 = vmul.f32 %v1797_v15, %v1797_v15  ;;  %v749_v42 = vmul.f32 1.442695, %v732_v26 }
  0xbb   :  { %v599_v57 = vpop.permute.xlu1 %598 }
  0xbc   :  { %v1800_v16 = vsub.f32 %v599_v57, %v1789_v10  ;;  %v715_v23 = vmul.f32 %v1805_v18, %v1805_v18  ;;  %v733_v29 = vmul.f32 -0.5, %v717_v24  ;;  %1291 = vpow2.f32 %v749_v42 }
  0xbd   :  { %v629_v3 = vpop.permute.xlu0 %628 }
  0xbe   :  { %v1815_v2 = vsub.f32 %v629_v3, %v1789_v10  ;;  %v718_v21 = vmul.f32 %v1800_v16, %v1800_v16  ;;  %v731_v39 = vmul.f32 -0.5, %v715_v23  ;;  %v751_v48 = vmul.f32 1.442695, %v733_v29 }
  0xbf   :  { %v604_v59 = vpop.permute.xlu1 %603 }
  0xc0   :  { %v1810_v22 = vsub.f32 %v604_v59, %v1789_v10  ;;  %v724_v31 = vmul.f32 %v1815_v2, %v1815_v2  ;;  %v734_v34 = vmul.f32 -0.5, %v718_v21  ;;  %1293 = vpow2.f32 %v751_v48 }
  0xc1   :  { %v639_v7 = vpop.permute.xlu0 %638 }
  0xc2   :  { %v1832_v12 = vsub.f32 %v639_v7, %v1789_v10  ;;  %v719_v27 = vmul.f32 %v1810_v22, %v1810_v22  ;;  %v740_v59 = vmul.f32 -0.5, %v724_v31  ;;  %v747_v7 = vmul.f32 1.442695, %v731_v39 }
  0xc3   :  { %v609_v61 = vpop.permute.xlu1 %608  ;;  %v1907_v39 = vadd.f32 %v1820_v25, %v1764_v46 }
  0xc4   :  { %v1825_v5 = vsub.f32 %v609_v61, %v1789_v10  ;;  %v726_v40 = vmul.f32 %v1832_v12, %v1832_v12  ;;  %v735_v43 = vmul.f32 -0.5, %v719_v27  ;;  %v765_v23 = vmul.f32 1.442695, %v740_v59 }
  0xc5   :  { %v649_v9 = vpop.permute.xlu0 %648  ;;  %v1899_v27 = vadd.f32 %v1820_v25, %v1774_v52  ;;  %v1912_v52 = vadd.f32 %v1820_v25, %v1776_v54  ;;  %v685_v59 = vand.u32 2147483647, %v1797_v15  ;;  %v683_v15 = vand.u32 2147483647, %v1805_v18 }
  0xc6   :  { %v1847_v32 = vsub.f32 %v649_v9, %v1789_v10  ;;  %v720_v35 = vmul.f32 %v1825_v5, %v1825_v5  ;;  %v742_v9 = vmul.f32 -0.5, %v726_v40  ;;  %v755_v50 = vmul.f32 1.442695, %v735_v43 }
  0xc7   :  { %v614_v63 = vpop.permute.xlu1 %613  ;;  %v684_v40 = vand.u32 2147483647, %v1792_v13  ;;  %v1923_v13 = vadd.f32 %v1820_v25, %v1766_v47  ;;  %v1292_v47 = vpop.eup %1291 }
  0xc8   :  { %v1837_v19 = vsub.f32 %v614_v63, %v1789_v10  ;;  %v728_v61 = vmul.f32 %v1847_v32, %v1847_v32  ;;  %v753_v63 = vmul.f32 1.442695, %v734_v34  ;;  %v736_v0 = vmul.f32 -0.5, %v720_v35 }
  0xc9   :  { %v1794_v14 = vpop.permute.xlu0 %658  ;;  %v769_v35 = vmul.f32 1.442695, %v742_v9 }
  0xca   :  { %v721_v53 = vmul.f32 %v1837_v19, %v1837_v19  ;;  %v744_v26 = vmul.f32 -0.5, %v728_v61  ;;  %1295 = vpow2.f32 %v753_v63  ;;  %v1919_v46 = vsub.f32 %v1794_v14, %v1789_v10  ;;  %v1294_v18 = vpop.eup %1293 }
  0xcb   :  { %v619_v1 = vpop.permute.xlu1 %618  ;;  %1297 = vpow2.f32 %v747_v7  ;;  %v687_v7 = vand.u32 2147483647, %v1810_v22 }
  0xcc   :  { %v1855_v36 = vsub.f32 %v619_v1, %v1789_v10  ;;  %v737_v24 = vmul.f32 -0.5, %v721_v53  ;;  %1299 = vpow2.f32 %v755_v50  ;;  %v773_v48 = vmul.f32 1.442695, %v744_v26  ;;  %2393 = vst [vmem:[#allocation3_spill] sm:$0xff] %v1919_v46 }
  0xcd   :  { %v1827_v6 = vpop.permute.xlu0 %850  ;;  %1301 = vpow2.f32 %v765_v23  ;;  %v1936_v50 = vmax.f32 %v685_v59, 1e-06  ;;  %v694_v23 = vand.u32 2147483647, %v1832_v12  ;;  %v696_v12 = vand.u32 2147483647, %v1847_v32 }
  0xce   :  { %v722_v1 = vmul.f32 %v1855_v36, %v1855_v36  ;;  %v759_v42 = vmul.f32 1.442695, %v737_v24  ;;  %v692_v24 = vand.u32 2147483647, %v1815_v2  ;;  %v1950_v2 = vadd.f32 %v1820_v25, %v1778_v56 }
  0xcf   :  { %v624_v4 = vpop.permute.xlu1 %623 }
  0xd0   :  { %v1861_v38 = vsub.f32 %v624_v4, %v1789_v10  ;;  %v738_v29 = vmul.f32 -0.5, %v722_v1  ;;  %v686_v1 = vand.u32 2147483647, %v1800_v16  ;;  %v730_v16 = vmul.f32 %v1919_v46, %v1919_v46 }
  0xd1   :  { %v1871_v55 = vpop.permute.xlu0 %860  ;;  %v1964_v56 = vmax.f32 %v692_v24, 1e-06  ;;  %v1990_v24 = vmax.f32 %v696_v12, 1e-06 }
  0xd2   :  { %v723_v3 = vmul.f32 %v1861_v38, %v1861_v38  ;;  %v761_v61 = vmul.f32 1.442695, %v738_v29  ;;  %v1952_v29 = vmax.f32 %v683_v15, 1e-06 }
  0xd3   :  { %v634_v8 = vpop.permute.xlu1 %633  ;;  %2398 = vst [vmem:[#allocation8_spill] sm:$0xff] %v1990_v24 }
  0xd4   :  { %v1874_v57 = vsub.f32 %v634_v8, %v1789_v10  ;;  %v739_v45 = vmul.f32 -0.5, %v723_v3 }
  0xd5   :  { %v1901_v31 = vpop.permute.xlu0 %870 }
  0xd6   :  { %v725_v21 = vmul.f32 %v1874_v57, %v1874_v57  ;;  %v763_v63 = vmul.f32 1.442695, %v739_v45 }
  0xd7   :  { %v644_v11 = vpop.permute.xlu1 %643 }
  0xd8   :  { %v1887_v4 = vsub.f32 %v644_v11, %v1789_v10  ;;  %v757_v11 = vmul.f32 1.442695, %v736_v0  ;;  %v741_v43 = vmul.f32 -0.5, %v725_v21  ;;  %v1925_v0 = vmax.f32 %v684_v40, 1e-06 }
  0xd9   :  { %v1929_v3 = vpop.permute.xlu0 %880  ;;  %v688_v21 = vand.u32 2147483647, %v1825_v5  ;;  %v1961_v40 = vadd.f32 %v1820_v25, %v1768_v49  ;;  %v691_v49 = vand.u32 2147483647, %v1861_v38 }
  0xda   :  { %v727_v34 = vmul.f32 %v1887_v4, %v1887_v4  ;;  %1303 = vpow2.f32 %v757_v11  ;;  %2394 = vst [vmem:[#allocation4_spill] sm:$0xff] %v1929_v3  ;;  %v767_v14 = vmul.f32 1.442695, %v741_v43  ;;  %v689_v11 = vand.u32 2147483647, %v1837_v19 }
  0xdb   :  { %v1802_v17 = vpop.permute.xlu1 %653  ;;  %1305 = vpow2.f32 %v769_v35  ;;  %v690_v19 = vand.u32 2147483647, %v1855_v36  ;;  %v1966_v59 = vmax.f32 %v688_v21, 1e-06  ;;  %v1977_v36 = vadd.f32 %v1820_v25, %v1780_v58 }
  0xdc   :  { %v743_v54 = vmul.f32 -0.5, %v727_v34  ;;  %1307 = vpow2.f32 %v759_v42  ;;  %v1934_v9 = vsub.f32 %v1802_v17, %v1789_v10  ;;  %v1296_v10 = vpop.eup %1295  ;;  %v1945_v17 = vmax.f32 %v686_v1, 1e-06 }
  0xdd   :  { %1309 = vpow2.f32 %v773_v48  ;;  %v1298_v45 = vpop.eup %1297  ;;  %v1954_v34 = vmax.f32 %v687_v7, 1e-06  ;;  %v746_v42 = vmul.f32 -0.5, %v730_v16  ;;  %v891_v43 = vpop.permute.xlu0 %890  ;;  %v1979_v1 = vadd.f32 0.2, %v1294_v18 }
  0xde   :  { %1311 = vpow2.f32 %v761_v61  ;;  %v771_v22 = vmul.f32 1.442695, %v743_v54  ;;  %v729_v5 = vmul.f32 %v1934_v9, %v1934_v9  ;;  %v1300_v35 = vpop.eup %1299  ;;  %v1968_v61 = vmax.f32 %v694_v23, 1e-06 }
  0xdf   :  { %v1842_v30 = vpop.permute.xlu1 %845  ;;  %1313 = vpow2.f32 %v763_v63  ;;  %v1302_v48 = vpop.eup %1301  ;;  %v1970_v63 = vadd.f32 0.2, %v1292_v47  ;;  %v1972_v54 = vmax.f32 %v689_v11, 1e-06  ;;  %v1983_v7 = vadd.f32 %v1820_v25, %v1772_v51  ;;  %v1988_v47 = vld [vmem:[%s2384_s6] ss:$0 sm:$0xff] }
  0xe0   :  { %1315 = vpow2.f32 %v767_v14  ;;  %v745_v14 = vmul.f32 -0.5, %v729_v5  ;;  %2397 = vst [vmem:[#allocation7_spill] sm:$0xff] %v1988_v47  ;;  %v1992_v16 = vadd.f32 0.2, %v1296_v10  ;;  %v1994_v21 = vmax.f32 %v690_v19, 1e-06 }
  0xe1   :  { %1317 = vpow2.f32 %v771_v22  ;;  %2396 = vst [vmem:[#allocation6_spill] sm:$0xff] %v1972_v54  ;;  %v693_v18 = vand.u32 2147483647, %v1874_v57  ;;  %v1999_v51 = vadd.f32 %v1820_v25, %v1782_v60  ;;  %v777_v22 = vmul.f32 1.442695, %v746_v42  ;;  %v901_v42 = vpop.permute.xlu0 %900 }
  0xe2   :  { %2399 = vst [vmem:[#allocation9_spill] sm:$0xff] %v1994_v21  ;;  %v695_v11 = vand.u32 2147483647, %v1887_v4  ;;  %v2004_v5 = vadd.f32 %v1820_v25, %v1784_v62  ;;  %v2007_v12 = vadd.f32 0.2, %v1298_v45  ;;  %v2014_v60 = vmul.f32 %v1988_v47, %v1827_v6 }
  0xe3   :  { %v1889_v8 = vpop.permute.xlu1 %855  ;;  %v2009_v3 = vmax.f32 %v691_v49, 1e-06  ;;  %v697_v57 = vand.u32 2147483647, %v1934_v9  ;;  %v775_v21 = vmul.f32 1.442695, %v745_v14  ;;  %v2020_v62 = vmul.f32 %v1988_v47, %v1871_v55 }
  0xe4   :  { %v1304_v32 = vpop.eup %1303  ;;  %v2022_v25 = vadd.f32 0.2, %v1302_v48  ;;  %v2026_v49 = vmax.f32 %v693_v18, 1e-06  ;;  %1319 = vpow2.f32 %v777_v22  ;;  %v2036_v14 = vmul.f32 %v1988_v47, %v1901_v31 }
  0xe5   :  { %v1306_v15 = vpop.eup %1305  ;;  %v2024_v45 = vadd.f32 0.2, %v1304_v32  ;;  %v2042_v32 = vmax.f32 %v697_v57, 1e-06  ;;  %1321 = vpow2.f32 %v775_v21  ;;  %v2055_v31 = vmul.f32 %v1988_v47, %v1889_v8 }
  0xe6   :  { %v1308_v58 = vpop.eup %1307  ;;  %v2028_v9 = vadd.f32 0.2, %v1306_v15  ;;  %2401 = vst [vmem:[#allocation11_spill] sm:$0xff] %v2036_v14  ;;  %v2046_v15 = vmul.f32 %v1988_v47, %v1842_v30  ;;  %v2058_v30 = vmul.f32 %v1988_v47, %v901_v42 }
  0xe7   :  { %v1914_v53 = vpop.permute.xlu1 %865  ;;  %v1310_v23 = vpop.eup %1309  ;;  %v2030_v6 = vadd.f32 0.2, %v1308_v58  ;;  %2404 = vst [vmem:[#allocation14_spill] sm:$0xff] %v2042_v32  ;;  %v2049_v58 = vmul.f32 %v1988_v47, %v891_v43 }
  0xe8   :  { %v1312_v19 = vpop.eup %1311  ;;  %v2038_v55 = vadd.f32 0.2, %v1310_v23  ;;  %v911_v32 = vpop.permute.xlu0 %910 }
  0xe9   :  { %v1314_v4 = vpop.eup %1313  ;;  %2400 = vst [vmem:[#allocation10_spill] sm:$0xff] %v2030_v6  ;;  %v2040_v48 = vadd.f32 0.2, %v1312_v19  ;;  %v2067_v21 = vmul.f32 %v1988_v47, %v911_v32 }
  0xea   :  { %v1316_v10 = vpop.eup %1315  ;;  %2402 = vst [vmem:[#allocation12_spill] sm:$0xff] %v2038_v55 }
  0xeb   :  { %v1943_v26 = vpop.permute.xlu1 %875  ;;  %2403 = vst [vmem:[#allocation13_spill] sm:$0xff] %v2040_v48  ;;  %v1318_v6 = vpop.eup %1317  ;;  %v2060_v54 = vadd.f32 0.2, %v1316_v10  ;;  %2405 = vst [vmem:[#allocation15_spill] sm:$0xff] %v2067_v21 }
  0xec   :  { %2395 = vst [vmem:[#allocation5_spill] sm:$0xff] %v1943_v26  ;;  %v2016_v26 = vadd.f32 0.2, %v1300_v35  ;;  %v2032_v35 = vmax.f32 %v695_v11, 1e-06 }
  0xed   :  { %v2051_v11 = vadd.f32 0.2, %v1314_v4  ;;  %v2064_v4 = vmul.f32 %v1988_v47, %v1914_v53  ;;  %v2076_v14 = vadd.f32 0.2, %v1318_v6 }
  0xef   :  { %v886_v38 = vpop.permute.xlu1 %885 }
  0xf3   :  { %v896_v46 = vpop.permute.xlu1 %895 }
 0x117   :  { %v1202_v18 = vpop.f32.mrb[0].mxu0  ;;  %v1214_v22 = vpop.f32.mrb[0].mxu1 }
 0x118   :  { %v422_v23 = vmul.f32 2.0, %v1202_v18  ;;  %v430_v19 = vmul.f32 2.0, %v1214_v22  ;;  %v320_v57 = vpop.f32.mrb[1].mxu0  ;;  %v360_v48 = vpop.f32.mrb[1].mxu1  ;;  %v2072_v22 = vmul.f32 %v1988_v47, %v886_v38 }
 0x119   :  { %v421_v43 = vmul.f32 2.0, %v320_v57  ;;  %v429_v55 = vmul.f32 2.0, %v360_v48 }
 0x11a   :  { %v438_v8 = vsub.f32 %v1880_v44, %v422_v23  ;;  %v446_v18 = vsub.f32 %v1907_v39, %v430_v19 }
 0x11b   :  { %v437_v42 = vsub.f32 %v1858_v37, %v421_v43  ;;  %v445_v48 = vsub.f32 %v1950_v2, %v429_v55  ;;  %v1205_v10 = vpop.f32.mrb[2].mxu0  ;;  %v1217_v57 = vpop.f32.mrb[2].mxu1  ;;  %v2087_v2 = vmul.f32 %v1988_v47, %v896_v46 }
 0x11c   :  { %v2078_v53 = vmax.f32 %v438_v8, 0.0  ;;  %v2080_v24 = vmax.f32 %v446_v18, 0.0  ;;  %v424_v32 = vmul.f32 2.0, %v1205_v10  ;;  %v432_v21 = vmul.f32 2.0, %v1217_v57  ;;  %v330_v44 = vpop.f32.mrb[3].mxu0  ;;  %v370_v23 = vpop.f32.mrb[3].mxu1 }
 0x11d   :  { %v2082_v39 = vmax.f32 %v437_v42, 0.0  ;;  %v2084_v38 = vmax.f32 %v445_v48, 0.0  ;;  %v423_v19 = vmul.f32 2.0, %v330_v44  ;;  %v431_v37 = vmul.f32 2.0, %v370_v23  ;;  %v906_v55 = vpop.permute.xlu1 %905  ;;  %v2092_v8 = vpop.eup %1319 }
 0x11e   :  { %1323 = vrsqrt.f32 %v2078_v53  ;;  %v440_v6 = vsub.f32 %v1850_v33, %v424_v32  ;;  %v448_v43 = vsub.f32 %v1923_v13, %v432_v21  ;;  %2406 = vst [vmem:[#allocation16_spill] sm:$0xff] %v2092_v8  ;;  %v2095_v18 = vmul.f32 %v1988_v47, %v906_v55 }
 0x11f   :  { %1325 = vrsqrt.f32 %v2080_v24  ;;  %v439_v42 = vsub.f32 %v1840_v28, %v423_v19  ;;  %v447_v48 = vsub.f32 %v1977_v36, %v431_v37  ;;  %v1208_v46 = vpop.f32.mrb[4].mxu0  ;;  %v1220_v10 = vpop.f32.mrb[4].mxu1  ;;  %vm478_vm2 = vcmp.eq.f32.partialorder %v2078_v53, inf }
 0x120   :  { %1327 = vrsqrt.f32 %v2082_v39  ;;  %v2101_v57 = vmax.f32 %v440_v6, 0.0  ;;  %v2103_v33 = vmax.f32 %v448_v43, 0.0  ;;  %v426_v13 = vmul.f32 2.0, %v1208_v46  ;;  %v340_v21 = vpop.f32.mrb[5].mxu0  ;;  %v380_v32 = vpop.f32.mrb[5].mxu1 }
 0x121   :  { %1329 = vrsqrt.f32 %v2084_v38  ;;  %v2106_v44 = vmax.f32 %v439_v42, 0.0  ;;  %v2108_v23 = vmax.f32 %v447_v48, 0.0  ;;  %v434_v28 = vmul.f32 2.0, %v1220_v10  ;;  %v2110_v19 = vpop.eup %1321 }
 0x122   :  { %2407 = vst [vmem:[#allocation17_spill] sm:$0xff] %v2110_v19  ;;  %1331 = vrsqrt.f32 %v2101_v57  ;;  %v442_v36 = vsub.f32 %v1867_v41, %v426_v13  ;;  %v425_v37 = vmul.f32 2.0, %v340_v21  ;;  %v433_v55 = vmul.f32 2.0, %v380_v32 }
 0x123   :  { %1333 = vrsqrt.f32 %v2103_v33  ;;  %v450_v6 = vsub.f32 %v1961_v40, %v434_v28  ;;  %v1211_v43 = vpop.f32.mrb[6].mxu0  ;;  %v1223_v46 = vpop.f32.mrb[6].mxu1  ;;  %v481_v42 = vand.u32 2147483648, %v2078_v53  ;;  %vm534_vm3 = vcmp.eq.f32.partialorder %v2080_v24, inf }
 0x124   :  { %1335 = vrsqrt.f32 %v2106_v44  ;;  %v2120_v48 = vmax.f32 %v442_v36, 0.0  ;;  %v441_v41 = vsub.f32 %v1899_v27, %v425_v37  ;;  %v449_v10 = vsub.f32 %v1999_v51, %v433_v55  ;;  %v350_v13 = vpop.f32.mrb[7].mxu0  ;;  %v390_v21 = vpop.f32.mrb[7].mxu1 }
 0x125   :  { %vm480_vm4 = vcmp.eq.f32.partialorder %v2078_v53, 0.0  ;;  %1337 = vrsqrt.f32 %v2108_v23  ;;  %v2126_v40 = vmax.f32 %v450_v6, 0.0  ;;  %v428_v32 = vmul.f32 2.0, %v1211_v43 }
 0x126   :  { %v436_v28 = vmul.f32 2.0, %v1223_v46  ;;  %1339 = vrsqrt.f32 %v2120_v48  ;;  %v2129_v8 = vmax.f32 %v441_v41, 0.0  ;;  %v2131_v36 = vmax.f32 %v449_v10, 0.0 }
 0x127   :  { %v427_v19 = vmul.f32 2.0, %v350_v13  ;;  %1341 = vrsqrt.f32 %v2126_v40  ;;  %v444_v27 = vsub.f32 %v1893_v20, %v428_v32  ;;  %v435_v37 = vmul.f32 2.0, %v390_v21 }
 0x128   :  { %v452_v51 = vsub.f32 %v1983_v7, %v436_v28  ;;  %v1324_v55 = vpop.eup %1323  ;;  %1343 = vrsqrt.f32 %v2129_v8  ;;  %vm536_vm5 = vcmp.eq.f32.partialorder %v2080_v24, 0.0  ;;  %v537_v43 = vand.u32 2147483648, %v2080_v24 }
 0x129   :  { %v443_v6 = vsub.f32 %v1912_v52, %v427_v19  ;;  %v1326_v46 = vpop.eup %1325  ;;  %1345 = vrsqrt.f32 %v2131_v36  ;;  %v2141_v41 = vmax.f32 %v444_v27, 0.0  ;;  %v451_v20 = vsub.f32 %v2004_v5, %v435_v37 }
 0x12a   :  { %v2143_v10 = vmax.f32 %v452_v51, 0.0  ;;  %v1328_v7 = vpop.eup %1327  ;;  %v477_v21 = vmul.f32 %v1324_v55, %v2078_v53  ;;  %v533_v52 = vmul.f32 %v1326_v46, %v2080_v24  ;;  %vm527_vm6 = vcmp.eq.f32.partialorder %v2084_v38, inf }
 0x12b   :  { %v2146_v13 = vmax.f32 %v443_v6, 0.0  ;;  %v1330_v19 = vpop.eup %1329  ;;  %1347 = vrsqrt.f32 %v2141_v41  ;;  %v2152_v32 = vmax.f32 %v451_v20, 0.0  ;;  %vm529_vm7 = vcmp.eq.f32.partialorder %v2084_v38, 0.0 }
 0x12c   :  { %2408 = vst [vmem:[#allocation18_spill] sm:$0xff] %v2143_v10  ;;  %v530_v28 = vand.u32 2147483648, %v2084_v38  ;;  %v1332_v27 = vpop.eup %1331  ;;  %1349 = vrsqrt.f32 %v2143_v10  ;;  %v479_v5 = vsel %vm478_vm2, %v2078_v53, %v477_v21  ;;  %v535_v51 = vsel %vm534_vm3, %v2080_v24, %v533_v52 }
 0x12d   :  { %v526_v37 = vmul.f32 %v1330_v19, %v2084_v38  ;;  %v1334_v55 = vpop.eup %1333  ;;  %1351 = vrsqrt.f32 %v2146_v13  ;;  %v482_v6 = vsel %vm480_vm4, %v481_v42, %v479_v5  ;;  %v538_v46 = vsel %vm536_vm5, %v537_v43, %v535_v51 }
 0x12e   :  { %v470_v20 = vmul.f32 %v1328_v7, %v2082_v39  ;;  %v1336_v47 = vpop.eup %1335  ;;  %1353 = vrsqrt.f32 %v2152_v32  ;;  %v796_v21 = vsub.f32 %v482_v6, %v1925_v0  ;;  %v804_v52 = vsub.f32 %v538_v46, %v1964_v56 }
 0x12f   :  { %v528_v19 = vsel %vm527_vm6, %v2084_v38, %v526_v37  ;;  %v1338_v10 = vpop.eup %1337  ;;  %vm471_vm8 = vcmp.eq.f32.partialorder %v2082_v39, inf  ;;  %vm473_vm9 = vcmp.eq.f32.partialorder %v2082_v39, 0.0  ;;  %v474_v24 = vand.u32 2147483648, %v2082_v39 }
 0x130   :  { %v531_v53 = vsel %vm529_vm7, %v530_v28, %v528_v19  ;;  %v2181_v42 = vpop.eup %1339  ;;  %v812_v43 = vand.u32 2147483647, %v796_v21  ;;  %v820_v0 = vand.u32 2147483647, %v804_v52  ;;  %v472_v7 = vsel %vm471_vm8, %v2082_v39, %v470_v20 }
 0x131   :  { %v803_v56 = vsub.f32 %v531_v53, %v2009_v3  ;;  %v2185_v5 = vpop.eup %1341  ;;  %v475_v51 = vsel %vm473_vm9, %v474_v24, %v472_v7  ;;  %v484_v38 = vmul.f32 %v1336_v47, %v2106_v44  ;;  %vm485_vm10 = vcmp.eq.f32.partialorder %v2106_v44, inf }
 0x132   :  { %vm487_vm11 = vcmp.eq.f32.partialorder %v2106_v44, 0.0  ;;  %v1344_v28 = vpop.eup %1343  ;;  %v828_v37 = vmul.f32 %v812_v43, %v1970_v63  ;;  %v836_v6 = vmul.f32 %v820_v0, %v2022_v25  ;;  %v795_v21 = vsub.f32 %v475_v51, %v1952_v29 }
 0x133   :  { %v819_v46 = vand.u32 2147483647, %v803_v56  ;;  %v2193_v3 = vpop.eup %1345  ;;  %v486_v39 = vsel %vm485_vm10, %v2106_v44, %v484_v38  ;;  %v488_v20 = vand.u32 2147483648, %v2106_v44  ;;  %v491_v47 = vmul.f32 %v1332_v27, %v2101_v57 }
 0x134   :  { %vm492_vm12 = vcmp.eq.f32.partialorder %v2101_v57, inf  ;;  %v946_v52 = vmul.f32 %v2014_v60, %v828_v37  ;;  %v954_v19 = vmul.f32 %v2049_v58, %v836_v6  ;;  %v811_v25 = vand.u32 2147483647, %v795_v21 }
 0x135   :  { %v835_v63 = vmul.f32 %v819_v46, %v2051_v11  ;;  %v2202_v53 = vpop.eup %1347  ;;  %v489_v29 = vsel %vm487_vm11, %v488_v20, %v486_v39  ;;  %v493_v24 = vsel %vm492_vm12, %v2101_v57, %v491_v47  ;;  %vm494_vm13 = vcmp.eq.f32.partialorder %v2101_v57, 0.0 }
 0x136   :  { %v495_v27 = vand.u32 2147483648, %v2101_v57  ;;  %v2209_v43 = vpop.eup %1349  ;;  %1050 = vadd.xlane.f32.xlu0 %v946_v52  ;;  %1066 = vadd.xlane.f32.xlu1 %v954_v19  ;;  %v827_v58 = vmul.f32 %v811_v25, %v2007_v12  ;;  %v797_v11 = vsub.f32 %v489_v29, %v1936_v50  ;;  %vm541_vm14 = vcmp.eq.f32.partialorder %v2108_v23, inf }
 0x137   :  { %v953_v60 = vmul.f32 %v2072_v22, %v835_v63  ;;  %v2215_v44 = vpop.eup %1351  ;;  %v540_v56 = vmul.f32 %v1338_v10, %v2108_v23  ;;  %vm543_vm15 = vcmp.eq.f32.partialorder %v2108_v23, 0.0  ;;  %v544_v57 = vand.u32 2147483648, %v2108_v23 }
 0x138   :  { %v496_v0 = vsel %vm494_vm13, %v495_v27, %v493_v24  ;;  %v2220_v7 = vpop.eup %1353  ;;  %v945_v51 = vmul.f32 %v2046_v15, %v827_v58  ;;  %v813_v22 = vand.u32 2147483647, %v797_v11  ;;  %v547_v50 = vmul.f32 %v1334_v55, %v2103_v33 }
 0x139   :  { %v798_v12 = vsub.f32 %v496_v0, %v1945_v17  ;;  %v542_v38 = vsel %vm541_vm14, %v2108_v23, %v540_v56  ;;  %vm548_vm0 = vcmp.eq.f32.partialorder %v2103_v33, inf  ;;  %vm550_vm1 = vcmp.eq.f32.partialorder %v2103_v33, 0.0  ;;  %v2409_v0 = vld [vmem:[#allocation8_spill] sm:$0xff] }
 0x13a   :  { %v551_v10 = vand.u32 2147483648, %v2103_v33  ;;  %1064 = vadd.xlane.f32.xlu0 %v953_v60  ;;  %1048 = vadd.xlane.f32.xlu1 %v945_v51  ;;  %v829_v37 = vmul.f32 %v813_v22, %v1979_v1  ;;  %v545_v46 = vsel %vm543_vm15, %v544_v57, %v542_v38  ;;  %v549_v15 = vsel %vm548_vm0, %v2103_v33, %v547_v50  ;;  %v2411_v38 = vld [vmem:[#allocation6_spill] sm:$0xff] }
 0x13b   :  { %v814_v6 = vand.u32 2147483647, %v798_v12  ;;  %v805_v17 = vsub.f32 %v545_v46, %v2026_v49  ;;  %v498_v55 = vmul.f32 %v1344_v28, %v2129_v8  ;;  %vm499_vm2 = vcmp.eq.f32.partialorder %v2129_v8, inf }
 0x13c   :  { %v552_v21 = vsel %vm550_vm1, %v551_v10, %v549_v15  ;;  %v947_v23 = vmul.f32 %v2055_v31, %v829_v37  ;;  %vm501_vm3 = vcmp.eq.f32.partialorder %v2129_v8, 0.0  ;;  %v502_v33 = vand.u32 2147483648, %v2129_v8 }
 0x13d   :  { %v830_v39 = vmul.f32 %v814_v6, %v1992_v16  ;;  %v806_v20 = vsub.f32 %v552_v21, %v1968_v61  ;;  %v821_v1 = vand.u32 2147483647, %v805_v17  ;;  %v500_v47 = vsel %vm499_vm2, %v2129_v8, %v498_v55  ;;  %v2414_v21 = vld [vmem:[#allocation18_spill] sm:$0xff] }
 0x13e   :  { %v505_v49 = vmul.f32 %v2181_v42, %v2120_v48  ;;  %1052 = vadd.xlane.f32.xlu0 %v947_v23  ;;  %vm506_vm4 = vcmp.eq.f32.partialorder %v2120_v48, inf  ;;  %vm508_vm5 = vcmp.eq.f32.partialorder %v2120_v48, 0.0  ;;  %v503_v16 = vsel %vm501_vm3, %v502_v33, %v500_v47  ;;  %v2415_v23 = vld [vmem:[#allocation5_spill] sm:$0xff]  ;;  %v2418_v33 = vld [vmem:[#allocation10_spill] sm:$0xff] }
 0x13f   :  { %v948_v28 = vmul.f32 %v2020_v62, %v830_v39  ;;  %v822_v52 = vand.u32 2147483647, %v806_v20  ;;  %v837_v61 = vmul.f32 %v821_v1, %v2060_v54  ;;  %v509_v19 = vand.u32 2147483648, %v2120_v48  ;;  %v2417_v20 = vld [vmem:[#allocation15_spill] sm:$0xff] }
 0x140   :  { %v507_v31 = vsel %vm506_vm4, %v2120_v48, %v505_v49  ;;  %v799_v42 = vsub.f32 %v503_v16, %v1954_v34  ;;  %v554_v62 = vmul.f32 %v2193_v3, %v2131_v36  ;;  %vm555_vm6 = vcmp.eq.f32.partialorder %v2131_v36, inf }
 0x141   :  { %1054 = vadd.xlane.f32.xlu1 %v948_v28  ;;  %v838_v8 = vmul.f32 %v822_v52, %v2028_v9  ;;  %v955_v63 = vmul.f32 %v2087_v2, %v837_v61  ;;  %v510_v25 = vsel %vm508_vm5, %v509_v19, %v507_v31  ;;  %vm557_vm7 = vcmp.eq.f32.partialorder %v2131_v36, 0.0  ;;  %v2419_v52 = vld [vmem:[#allocation14_spill] sm:$0xff]  ;;  %v2420_v31 = vld [vmem:[#allocation3_spill] sm:$0xff] }
 0x142   :  { %v558_v54 = vand.u32 2147483648, %v2131_v36  ;;  %v815_v48 = vand.u32 2147483647, %v799_v42  ;;  %v800_v24 = vsub.f32 %v510_v25, %v1966_v59  ;;  %v556_v9 = vsel %vm555_vm6, %v2131_v36, %v554_v62  ;;  %v2423_v62 = vld [vmem:[#allocation17_spill] sm:$0xff] }
 0x143   :  { %v956_v29 = vmul.f32 %v2058_v30, %v838_v8  ;;  %1068 = vadd.xlane.f32.xlu0 %v955_v63  ;;  %v561_v3 = vmul.f32 %v2185_v5, %v2126_v40  ;;  %vm562_vm8 = vcmp.eq.f32.partialorder %v2126_v40, inf  ;;  %vm564_vm9 = vcmp.eq.f32.partialorder %v2126_v40, 0.0  ;;  %v916_v8 = vpop.permute.xlu1 %915 }
 0x144   :  { %v559_v34 = vsel %vm557_vm7, %v558_v54, %v556_v9  ;;  %v831_v2 = vmul.f32 %v815_v48, %v2016_v26  ;;  %v816_v27 = vand.u32 2147483647, %v800_v24  ;;  %v565_v60 = vand.u32 2147483648, %v2126_v40 }
 0x145   :  { %1070 = vadd.xlane.f32.xlu1 %v956_v29  ;;  %v807_v30 = vsub.f32 %v559_v34, %v2032_v35  ;;  %v563_v59 = vsel %vm562_vm8, %v2126_v40, %v561_v3  ;;  %v512_v36 = vmul.f32 %v2215_v44, %v2146_v13  ;;  %vm513_vm10 = vcmp.eq.f32.partialorder %v2146_v13, inf  ;;  %v2410_v44 = vld [vmem:[#allocation11_spill] sm:$0xff]  ;;  %v2424_v29 = vld [vmem:[#allocation13_spill] sm:$0xff] }
 0x146   :  { %vm515_vm11 = vcmp.eq.f32.partialorder %v2146_v13, 0.0  ;;  %v949_v5 = vmul.f32 %v2064_v4, %v831_v2  ;;  %v832_v58 = vmul.f32 %v816_v27, %v2024_v45  ;;  %v566_v26 = vsel %vm564_vm9, %v565_v60, %v563_v59  ;;  %v2425_v59 = vld [vmem:[#allocation16_spill] sm:$0xff] }
 0x147   :  { %v823_v11 = vand.u32 2147483647, %v807_v30  ;;  %v808_v56 = vsub.f32 %v566_v26, %v2409_v0  ;;  %v514_v35 = vsel %vm513_vm10, %v2146_v13, %v512_v36  ;;  %v516_v57 = vand.u32 2147483648, %v2146_v13  ;;  %v921_v30 = vpop.permute.xlu0 %920 }
 0x148   :  { %v519_v40 = vmul.f32 %v2202_v53, %v2141_v41  ;;  %1056 = vadd.xlane.f32.xlu0 %v949_v5  ;;  %v950_v51 = vmul.f32 %v2410_v44, %v832_v58  ;;  %vm520_vm12 = vcmp.eq.f32.partialorder %v2141_v41, inf  ;;  %vm522_vm13 = vcmp.eq.f32.partialorder %v2141_v41, 0.0 }
 0x149   :  { %v839_v22 = vmul.f32 %v823_v11, %v2076_v14  ;;  %v824_v45 = vand.u32 2147483647, %v808_v56  ;;  %v517_v4 = vsel %vm515_vm11, %v516_v57, %v514_v35  ;;  %v523_v50 = vand.u32 2147483648, %v2141_v41  ;;  %v2412_v14 = vld [vmem:[#allocation12_spill] sm:$0xff] }
 0x14a   :  { %v521_v12 = vsel %vm520_vm12, %v2141_v41, %v519_v40  ;;  %1058 = vadd.xlane.f32.xlu1 %v950_v51  ;;  %v801_v53 = vsub.f32 %v517_v4, %v2411_v38  ;;  %v568_v10 = vmul.f32 %v2220_v7, %v2152_v32  ;;  %vm569_vm14 = vcmp.eq.f32.partialorder %v2152_v32, inf  ;;  %v2413_v41 = vld [vmem:[#allocation9_spill] sm:$0xff]  ;;  %v2416_v7 = vld [vmem:[#allocation7_spill] sm:$0xff] }
 0x14b   :  { %v957_v13 = vmul.f32 %v2095_v18, %v839_v22  ;;  %v840_v37 = vmul.f32 %v824_v45, %v2412_v14  ;;  %v524_v6 = vsel %vm522_vm13, %v523_v50, %v521_v12  ;;  %vm571_vm15 = vcmp.eq.f32.partialorder %v2152_v32, 0.0 }
 0x14c   :  { %v572_v46 = vand.u32 2147483648, %v2152_v32  ;;  %v817_v15 = vand.u32 2147483647, %v801_v53  ;;  %v802_v17 = vsub.f32 %v524_v6, %v2413_v41  ;;  %v570_v18 = vsel %vm569_vm14, %v2152_v32, %v568_v10 }
 0x14d   :  { %1072 = vadd.xlane.f32.xlu0 %v957_v13  ;;  %v575_v55 = vmul.f32 %v2209_v43, %v2414_v21  ;;  %v935_v39 = vmul.f32 %v2416_v7, %v2415_v23  ;;  %v958_v1 = vmul.f32 %v2417_v20, %v840_v37  ;;  %vm576_vm0 = vcmp.eq.f32.partialorder %v2414_v21, inf  ;;  %v2422_v43 = vld [vmem:[#allocation4_spill] sm:$0xff] }
 0x14e   :  { %v573_v47 = vsel %vm571_vm15, %v572_v46, %v570_v18  ;;  %v833_v49 = vmul.f32 %v817_v15, %v2418_v33  ;;  %v818_v28 = vand.u32 2147483647, %v802_v17  ;;  %v2421_v32 = vand.u32 2147483647, %v2420_v31 }
 0x14f   :  { %v809_v61 = vsub.f32 %v573_v47, %v2419_v52  ;;  %v577_v16 = vsel %vm576_vm0, %v2414_v21, %v575_v55  ;;  %v936_v42 = vmul.f32 %v2416_v7, %v2422_v43  ;;  %1074 = vadd.xlane.f32.xlu1 %v958_v1  ;;  %v793_v63 = vadd.f32 0.2, %v2423_v62 }
 0x150   :  { %v714_v19 = vmax.f32 %v2421_v32, 1e-06  ;;  %v579_v25 = vand.u32 2147483648, %v2414_v21  ;;  %v951_v54 = vmul.f32 %v935_v39, %v833_v49  ;;  %v834_v48 = vmul.f32 %v818_v28, %v2424_v29 }
 0x151   :  { %v825_v24 = vand.u32 2147483647, %v809_v61  ;;  %vm578_vm1 = vcmp.eq.f32.partialorder %v2414_v21, 0.0  ;;  %v943_v34 = vmul.f32 %v2416_v7, %v916_v8  ;;  %v794_v36 = vadd.f32 0.2, %v2425_v59 }
 0x152   :  { %v580_v9 = vsel %vm578_vm1, %v579_v25, %v577_v16  ;;  %1060 = vadd.xlane.f32.xlu0 %v951_v54  ;;  %v952_v3 = vmul.f32 %v936_v42, %v834_v48  ;;  %v944_v58 = vmul.f32 %v2416_v7, %v921_v30  ;;  %vm1080_vm2 = vcmask 7168  }
 0x153   :  { %v841_v2 = vmul.f32 %v825_v24, %v793_v63  ;;  %v810_v27 = vsub.f32 %v580_v9, %v714_v19 }
 0x154   :  { %1062 = vadd.xlane.f32.xlu1 %v952_v3 }
 0x155   :  { %v959_v60 = vmul.f32 %v943_v34, %v841_v2  ;;  %v826_v5 = vand.u32 2147483647, %v810_v27 }
 0x157   :  { %1076 = vadd.xlane.f32.xlu0 %v959_v60  ;;  %v842_v11 = vmul.f32 %v826_v5, %v794_v36 }
 0x159   :  { %v960_v26 = vmul.f32 %v944_v58, %v842_v11 }
 0x15b   :  { %1078 = vadd.xlane.f32.xlu1 %v960_v26 }
 0x1c3   :  { %v1067_v0 = vpop.xlane.xlu1 %1066  ;;  %v1051_v56 = vpop.xlane.xlu0 %1050 }
 0x1c4   :  { %1090 = vst.msk [vmem:[%s2385_s7 + $0x48] sm:$0xff] %vm1080_vm2, %v1067_v0  ;;  %1082 = vst.msk [vmem:[%s2385_s7 + $0x8] sm:$0xff] %vm1080_vm2, %v1051_v56 }
 0x1c7   :  { %v1049_v35 = vpop.xlane.xlu1 %1048  ;;  %v1065_v57 = vpop.xlane.xlu0 %1064 }
 0x1c8   :  { %1081 = vst.msk [vmem:[%s2385_s7] sm:$0xff] %vm1080_vm2, %v1049_v35  ;;  %1089 = vst.msk [vmem:[%s2385_s7 + $0x40] sm:$0xff] %vm1080_vm2, %v1065_v57 }
 0x1cb   :  { %v1053_v40 = vpop.xlane.xlu0 %1052 }
 0x1cc   :  { %1083 = vst.msk [vmem:[%s2385_s7 + $0x10] sm:$0xff] %vm1080_vm2, %v1053_v40 }
 0x1ce   :  { %v1055_v44 = vpop.xlane.xlu1 %1054 }
 0x1cf   :  { %1084 = vst.msk [vmem:[%s2385_s7 + $0x18] sm:$0xff] %vm1080_vm2, %v1055_v44 }
 0x1d0   :  { %v1069_v51 = vpop.xlane.xlu0 %1068 }
 0x1d1   :  { %1091 = vst.msk [vmem:[%s2385_s7 + $0x50] sm:$0xff] %vm1080_vm2, %v1069_v51 }
 0x1d2   :  { %v1071_v22 = vpop.xlane.xlu1 %1070 }
 0x1d3   :  { %1092 = vst.msk [vmem:[%s2385_s7 + $0x58] sm:$0xff] %vm1080_vm2, %v1071_v22 }
 0x1d5   :  { %v1057_v45 = vpop.xlane.xlu0 %1056 }
 0x1d6   :  { %1085 = vst.msk [vmem:[%s2385_s7 + $0x20] sm:$0xff] %vm1080_vm2, %v1057_v45 }
 0x1d7   :  { %v1059_v4 = vpop.xlane.xlu1 %1058 }
 0x1d8   :  { %1086 = vst.msk [vmem:[%s2385_s7 + $0x28] sm:$0xff] %vm1080_vm2, %v1059_v4 }
 0x1da   :  { %v1073_v12 = vpop.xlane.xlu0 %1072 }
 0x1db   :  { %1093 = vst.msk [vmem:[%s2385_s7 + $0x60] sm:$0xff] %vm1080_vm2, %v1073_v12 }
 0x1dc   :  { %v1075_v50 = vpop.xlane.xlu1 %1074 }
 0x1dd   :  { %1094 = vst.msk [vmem:[%s2385_s7 + $0x68] sm:$0xff] %vm1080_vm2, %v1075_v50 }
 0x1df   :  { %v1061_v13 = vpop.xlane.xlu0 %1060 }
 0x1e0   :  { %1087 = vst.msk [vmem:[%s2385_s7 + $0x30] sm:$0xff] %vm1080_vm2, %v1061_v13 }
 0x1e1   :  { %v1063_v38 = vpop.xlane.xlu1 %1062 }
 0x1e2   :  { %1088 = vst.msk [vmem:[%s2385_s7 + $0x38] sm:$0xff] %vm1080_vm2, %v1063_v38 }
 0x1e4   :  { %v1077_v53 = vpop.xlane.xlu0 %1076 }
 0x1e5   :  { %1095 = vst.msk [vmem:[%s2385_s7 + $0x70] sm:$0xff] %vm1080_vm2, %v1077_v53 }
 0x1e8   :  { %v1079_v10 = vpop.xlane.xlu1 %1078 }
 0x1e9   :  { %1096 = vst.msk [vmem:[%s2385_s7 + $0x78] sm:$0xff] %vm1080_vm2, %v1079_v10 }

</bundles_post_ra>
